<compile_context>
chip_gen: v7x
topology: tpu7x:2x2x1
jax: 0.10.0
libtpu: 0.0.40
codegen_flags: <defaults>
</compile_context>

<pallas_src>
import functools

import jax
import jax.numpy as jnp
from jax.experimental import pallas as pl
from jax.experimental.pallas import tpu as pltpu


def _conv_tanh_mul_kernel(w_ref, p_ref, out_ref):
    # w_ref: (Cout_pad, K_pad)   p_ref: (K_pad, tile_m)   out_ref: (Cout_pad, tile_m)
    # Bias is already folded into the last used column of w_ref / row of p_ref.
    v1 = jnp.dot(w_ref[...], p_ref[...], preferred_element_type=jnp.float32)
    out_ref[...] = v1 * jnp.tanh(v1)


def _im2col_T(x, k, stride, padding, dilation):
    """x: (N, C, H, W) -> patches^T (C*k*k, N*Ho*Wo), plus (Ho, Wo).

    Single-HLO patch extraction; feature axis is ordered (ci, kh, kw), which
    matches weight.reshape(Cout, Cin*k*k).  M axis is ordered (n, ho, wo).
    """
    n, c, h, w = x.shape
    ho = (h + 2 * padding - dilation * (k - 1) - 1) // stride + 1
    wo = (w + 2 * padding - dilation * (k - 1) - 1) // stride + 1

    patches = jax.lax.conv_general_dilated_patches(
        x,
        filter_shape=(k, k),
        window_strides=(stride, stride),
        padding=((padding, padding), (padding, padding)),
        rhs_dilation=(dilation, dilation),
        dimension_numbers=("NCHW", "OIHW", "NCHW"),
    )  # (N, C*k*k, Ho, Wo)

    kdim = c * k * k
    if n == 1:
        patches_t = patches.reshape(kdim, ho * wo)
    else:
        patches_t = jnp.transpose(patches, (1, 0, 2, 3)).reshape(kdim, n * ho * wo)
    return patches_t, ho, wo


@functools.partial(jax.jit, static_argnames=("stride", "padding", "dilation"))
def conv_tanh_mul(x, weight, bias, *, stride=2, padding=2, dilation=2):
    """x: (N, Cin, H, W) f32, weight: (Cout, Cin, k, k), bias: (Cout,)."""
    n, cin, _, _ = x.shape
    cout, _, k, _ = weight.shape

    patches_t, ho, wo = _im2col_T(x, k, stride, padding, dilation)  # (K, M)
    kdim, m = patches_t.shape

    # Pad to hardware-friendly tiles: sublanes multiple of 8, lanes multiple of 128.
    # K gets one extra row for the folded bias (ones row).
    cout_pad = max(8, pl.cdiv(cout, 8) * 8)
    k_pad = max(128, pl.cdiv(kdim + 1, 128) * 128)
    m_pad = max(128, pl.cdiv(m, 128) * 128)

    # Lane-dense M tiling: single step at small sizes, "parallel" axis when large.
    max_tile_m = 2048
    if m_pad <= max_tile_m:
        tile_m = m_pad
    else:
        tile_m = max_tile_m
        m_pad = pl.cdiv(m_pad, tile_m) * tile_m
    grid_m = m_pad // tile_m

    # Fold bias: extra weight column + ones row in the patch matrix.
    w_aug = jnp.concatenate([weight.reshape(cout, cin * k * k),
                             bias.reshape(cout, 1)], axis=1)          # (Cout, K+1)
    p_aug = jnp.concatenate([patches_t,
                             jnp.ones((1, m), dtype=patches_t.dtype)], axis=0)  # (K+1, M)

    w_p = jnp.pad(w_aug, ((0, cout_pad - cout), (0, k_pad - (kdim + 1))))
    p_p = jnp.pad(p_aug, ((0, k_pad - (kdim + 1)), (0, m_pad - m)))

    cost = pl.CostEstimate(
        flops=2 * cout * (kdim + 1) * m,
        transcendentals=cout * m,
        bytes_accessed=4 * (w_p.size + p_p.size + cout_pad * m_pad),
    )

    out_p = pl.pallas_call(
        _conv_tanh_mul_kernel,
        out_shape=jax.ShapeDtypeStruct((cout_pad, m_pad), jnp.float32),
        grid_spec=pltpu.PrefetchScalarGridSpec(
            num_scalar_prefetch=0,
            grid=(grid_m,),
            in_specs=[
                pl.BlockSpec((cout_pad, k_pad), lambda i: (0, 0)),
                pl.BlockSpec((k_pad, tile_m), lambda i: (0, i)),
            ],
            out_specs=pl.BlockSpec((cout_pad, tile_m), lambda i: (0, i)),
        ),
        compiler_params=pltpu.CompilerParams(
            dimension_semantics=("parallel",)),
        cost_estimate=cost,
    )(w_p, p_p)

    out = out_p[:cout, :m]                                # (Cout, N*Ho*Wo)
    if n == 1:
        out = out.reshape(1, cout, ho, wo)                # no transpose needed
    else:
        out = jnp.transpose(out.reshape(cout, n, ho, wo), (1, 0, 2, 3))
    return out


if __name__ == "__main__":
    key = jax.random.PRNGKey(0)
    kx, kw, kb = jax.random.split(key, 3)

    # Shapes from the PyTorch module spec: x1 = (1, 3, 64, 64), Conv2d(3, 6, 5).
    N, CIN, H, W = 1, 3, 64, 64
    COUT, KSZ = 6, 5

    x = jax.random.normal(kx, (N, CIN, H, W), dtype=jnp.float32)
    weight = 0.1 * jax.random.normal(kw, (COUT, CIN, KSZ, KSZ), dtype=jnp.float32)
    bias = 0.1 * jax.random.normal(kb, (COUT,), dtype=jnp.float32)

    out = conv_tanh_mul(x, weight, bias, stride=2, padding=2, dilation=2)
    out = jax.block_until_ready(out)

    # Reference check (pure JAX) for the same semantics.
    v1_ref = jax.lax.conv_general_dilated(
        x, weight, window_strides=(2, 2), padding=((2, 2), (2, 2)),
        rhs_dilation=(2, 2),
        dimension_numbers=("NCHW", "OIHW", "NCHW")) + bias[None, :, None, None]
    ref = v1_ref * jnp.tanh(v1_ref)
    assert out.shape == ref.shape, (out.shape, ref.shape)
    assert jnp.allclose(out, ref, atol=2e-4, rtol=2e-4), float(
        jnp.max(jnp.abs(out - ref)))

    print("KERNEL_OK")
</pallas_src>

<mosaic_0001>
module attributes {stable_mosaic.version = 11 : i64} {
  func.func @_conv_tanh_mul_kernel(%arg0: i32, %arg1: memref<8x128xf32, #tpu.memory_space<vmem>>, %arg2: memref<128x1024xf32, #tpu.memory_space<vmem>>, %arg3: memref<8x1024xf32, #tpu.memory_space<vmem>>) attributes {dimension_semantics = [#tpu.dimension_semantics<parallel>], iteration_bounds = array<i64: 1>, scalar_prefetch = 0 : i64, scratch_operands = 0 : i64, tpu.core_type = #tpu.core_type<tc>, window_params = [{pipeline_mode = #tpu.pipeline_mode<synchronous>, transform_indices = @transform_0, window_bounds = array<i64: 8, 128>}, {transform_indices = @transform_1, window_bounds = array<i64: 128, 1024>}, {transform_indices = @transform_2, window_bounds = array<i64: 8, 1024>}]} {
    %c0 = arith.constant 0 : index
    %c0_0 = arith.constant 0 : index
    %0 = vector.load %arg1[%c0, %c0_0] : memref<8x128xf32, #tpu.memory_space<vmem>>, vector<8x128xf32>
    %c0_1 = arith.constant 0 : index
    %c0_2 = arith.constant 0 : index
    %1 = vector.load %arg2[%c0_1, %c0_2] : memref<128x1024xf32, #tpu.memory_space<vmem>>, vector<128x1024xf32>
    %cst = arith.constant dense<0.000000e+00> : vector<8x1024xf32>
    %2 = tpu.matmul %0, %1, %cst {dimension_numbers = #tpu.dot_dimension_numbers<[1], [0], [0], [1], [0, 0, 1, 1], [], []>} : vector<8x128xf32>, vector<128x1024xf32>, vector<8x1024xf32> -> vector<8x1024xf32>
    %3 = math.tanh %2 : vector<8x1024xf32>
    %4 = arith.mulf %2, %3 : vector<8x1024xf32>
    %c0_3 = arith.constant 0 : index
    %c0_4 = arith.constant 0 : index
    %5 = vector.load %arg3[%c0_3, %c0_4] : memref<8x1024xf32, #tpu.memory_space<vmem>>, vector<8x1024xf32>
    tpu.vector_store %arg3[%c0_3, %c0_4], %4 {strides = array<i32>} : memref<8x1024xf32, #tpu.memory_space<vmem>>, vector<8x1024xf32>,
    return
  }
  func.func @transform_0(%arg0: i32) -> (i32, i32) {
    %c0_i32 = arith.constant 0 : i32
    %c0_i32_0 = arith.constant 0 : i32
    %c0_i32_1 = arith.constant 0 : i32
    return %c0_i32, %c0_i32_0 : i32, i32
  }
  func.func @transform_1(%arg0: i32) -> (i32, i32) {
    %c0_i32 = arith.constant 0 : i32
    %c0_i32_0 = arith.constant 0 : i32
    return %c0_i32, %arg0 : i32, i32
  }
  func.func @transform_2(%arg0: i32) -> (i32, i32) {
    %c0_i32 = arith.constant 0 : i32
    %c0_i32_0 = arith.constant 0 : i32
    return %c0_i32, %arg0 : i32, i32
  }
}

</mosaic_0001>

<bundles_post_ra>
// kernel: conv_tanh_mul.1
= control target key start
LH: loop header
LB: loop body
LE: loop exit
PB: predicated region body
PF: predicated region fallthrough
CT: control target
= control target key end

     0   :  { %v597_v3 = vmov 0.0   ;;  %s1034_s1 = inlined_call_operand.vmem [shape: f32[128,1024], index: 1, kind: input, shape index: {}]   ;;  %s1035_s0 = inlined_call_operand.vmem [shape: f32[8,128], index: 0, kind: input, shape index: {}]   ;;  %s1036_s2 = inlined_call_operand.vmem [shape: f32[8,1024], index: 2, kind: output, shape index: {}]  }
   0x1   :  { %v13_v0 = vld [vmem:[%s1034_s1 + $0x8] sm:$0xff]  ;;  %v15_v2 = vld [vmem:[%s1034_s1 + $0x18] sm:$0xff]  ;;  %204 = vmatprep.mubr.f32.mxu0 %v597_v3  ;;  %275 = vmatprep.mubr.f32.mxu1 %v597_v3  ;;  %v12_v6 = vld [vmem:[%s1034_s1] sm:$0xff] }
   0x2   :  { %v21_v1 = vld [vmem:[%s1034_s1 + $0x48] sm:$0xff]  ;;  %v23_v5 = vld [vmem:[%s1034_s1 + $0x58] sm:$0xff]  ;;  %v20_v7 = vld [vmem:[%s1034_s1 + $0x40] sm:$0xff] }
   0x3   :  { %v452_v4 = vpack.c.bf16 %v21_v1, %v13_v0  ;;  %v484_v8 = vpack.c.bf16 %v23_v5, %v15_v2  ;;  %v454_v9 = vpack.c.bf16 %v20_v7, %v12_v6  ;;  %v14_v10 = vld [vmem:[%s1034_s1 + $0x10] sm:$0xff]  ;;  %v29_v12 = vld [vmem:[%s1034_s1 + $0x88] sm:$0xff]  ;;  %v31_v15 = vld [vmem:[%s1034_s1 + $0x98] sm:$0xff] }
   0x4   :  { %v22_v11 = vld [vmem:[%s1034_s1 + $0x50] sm:$0xff]  ;;  %v37_v14 = vld [vmem:[%s1034_s1 + $0xc8] sm:$0xff]  ;;  %v39_v16 = vld [vmem:[%s1034_s1 + $0xd8] sm:$0xff] }
   0x5   :  { %453 = vmatprep.subr.bf16.mxu0 %v452_v4  ;;  %v486_v13 = vpack.c.bf16 %v22_v11, %v14_v10  ;;  %485 = vmatprep.subr.bf16.mxu1 %v484_v8  ;;  %v456_v17 = vpack.c.bf16 %v37_v14, %v29_v12  ;;  %v488_v18 = vpack.c.bf16 %v39_v16, %v31_v15  ;;  %v28_v19 = vld [vmem:[%s1034_s1 + $0x80] sm:$0xff]  ;;  %v30_v21 = vld [vmem:[%s1034_s1 + $0x90] sm:$0xff]  ;;  %v45_v24 = vld [vmem:[%s1034_s1 + $0x108] sm:$0xff] }
   0x6   :  { %455 = vmatpush1.bf16.msra.mxu0 %v454_v9  ;;  %v36_v20 = vld [vmem:[%s1034_s1 + $0xc0] sm:$0xff]  ;;  %v38_v23 = vld [vmem:[%s1034_s1 + $0xd0] sm:$0xff]  ;;  %v53_v25 = vld [vmem:[%s1034_s1 + $0x148] sm:$0xff] }
   0x7   :  { %487 = vmatpush1.bf16.msra.mxu1 %v486_v13  ;;  %v458_v22 = vpack.c.bf16 %v36_v20, %v28_v19  ;;  %457 = vmatprep.subr.bf16.mxu0 %v456_v17  ;;  %v490_v26 = vpack.c.bf16 %v38_v23, %v30_v21  ;;  %v460_v27 = vpack.c.bf16 %v53_v25, %v45_v24  ;;  %v47_v28 = vld [vmem:[%s1034_s1 + $0x118] sm:$0xff]  ;;  %v44_v30 = vld [vmem:[%s1034_s1 + $0x100] sm:$0xff]  ;;  %v46_v33 = vld [vmem:[%s1034_s1 + $0x110] sm:$0xff] }
   0x8   :  { %489 = vmatprep.subr.bf16.mxu1 %v488_v18  ;;  %v55_v29 = vld [vmem:[%s1034_s1 + $0x158] sm:$0xff]  ;;  %v52_v32 = vld [vmem:[%s1034_s1 + $0x140] sm:$0xff]  ;;  %v54_v34 = vld [vmem:[%s1034_s1 + $0x150] sm:$0xff] }
   0x9   :  { %v492_v31 = vpack.c.bf16 %v55_v29, %v47_v28  ;;  %v462_v35 = vpack.c.bf16 %v52_v32, %v44_v30  ;;  %v61_v36 = vld [vmem:[%s1034_s1 + $0x188] sm:$0xff]  ;;  %v63_v38 = vld [vmem:[%s1034_s1 + $0x198] sm:$0xff]  ;;  %v494_v39 = vpack.c.bf16 %v54_v34, %v46_v33  ;;  %v60_v42 = vld [vmem:[%s1034_s1 + $0x180] sm:$0xff] }
   0xa   :  { %459 = vmatpush1.bf16.msra.mxu0 %v458_v22  ;;  %v69_v37 = vld [vmem:[%s1034_s1 + $0x1c8] sm:$0xff]  ;;  %v71_v41 = vld [vmem:[%s1034_s1 + $0x1d8] sm:$0xff]  ;;  %v68_v43 = vld [vmem:[%s1034_s1 + $0x1c0] sm:$0xff] }
   0xb   :  { %491 = vmatpush1.bf16.msra.mxu1 %v490_v26  ;;  %461 = vmatprep.subr.bf16.mxu0 %v460_v27  ;;  %v464_v40 = vpack.c.bf16 %v69_v37, %v61_v36  ;;  %v496_v44 = vpack.c.bf16 %v71_v41, %v63_v38  ;;  %v62_v45 = vld [vmem:[%s1034_s1 + $0x190] sm:$0xff]  ;;  %v77_v47 = vld [vmem:[%s1034_s1 + $0x208] sm:$0xff]  ;;  %v79_v49 = vld [vmem:[%s1034_s1 + $0x218] sm:$0xff]  ;;  %v466_v51 = vpack.c.bf16 %v68_v43, %v60_v42 }
   0xc   :  { %493 = vmatprep.subr.bf16.mxu1 %v492_v31  ;;  %v70_v46 = vld [vmem:[%s1034_s1 + $0x1d0] sm:$0xff]  ;;  %v85_v48 = vld [vmem:[%s1034_s1 + $0x248] sm:$0xff]  ;;  %v87_v50 = vld [vmem:[%s1034_s1 + $0x258] sm:$0xff] }
   0xd   :  { %v498_v52 = vpack.c.bf16 %v70_v46, %v62_v45  ;;  %v468_v53 = vpack.c.bf16 %v85_v48, %v77_v47  ;;  %v76_v54 = vld [vmem:[%s1034_s1 + $0x200] sm:$0xff]  ;;  %v78_v56 = vld [vmem:[%s1034_s1 + $0x210] sm:$0xff]  ;;  %v500_v57 = vpack.c.bf16 %v87_v50, %v79_v49  ;;  %v93_v59 = vld [vmem:[%s1034_s1 + $0x288] sm:$0xff] }
   0xe   :  { %463 = vmatpush1.bf16.msra.mxu0 %v462_v35  ;;  %v84_v55 = vld [vmem:[%s1034_s1 + $0x240] sm:$0xff]  ;;  %v86_v58 = vld [vmem:[%s1034_s1 + $0x250] sm:$0xff]  ;;  %v101_v60 = vld [vmem:[%s1034_s1 + $0x2c8] sm:$0xff] }
   0xf   :  { %495 = vmatpush1.bf16.msra.mxu1 %v494_v39  ;;  %465 = vmatprep.subr.bf16.mxu0 %v464_v40  ;;  %v95_v61 = vld [vmem:[%s1034_s1 + $0x298] sm:$0xff]  ;;  %v470_v63 = vpack.c.bf16 %v84_v55, %v76_v54  ;;  %v502_v0 = vpack.c.bf16 %v86_v58, %v78_v56  ;;  %v472_v1 = vpack.c.bf16 %v101_v60, %v93_v59  ;;  %v92_v2 = vld [vmem:[%s1034_s1 + $0x280] sm:$0xff]  ;;  %v94_v5 = vld [vmem:[%s1034_s1 + $0x290] sm:$0xff] }
  0x10   :  { %497 = vmatprep.subr.bf16.mxu1 %v496_v44  ;;  %v103_v62 = vld [vmem:[%s1034_s1 + $0x2d8] sm:$0xff]  ;;  %v100_v4 = vld [vmem:[%s1034_s1 + $0x2c0] sm:$0xff]  ;;  %v102_v7 = vld [vmem:[%s1034_s1 + $0x2d0] sm:$0xff] }
  0x11   :  { %v504_v6 = vpack.c.bf16 %v103_v62, %v95_v61  ;;  %v109_v8 = vld [vmem:[%s1034_s1 + $0x308] sm:$0xff]  ;;  %v111_v10 = vld [vmem:[%s1034_s1 + $0x318] sm:$0xff]  ;;  %v474_v12 = vpack.c.bf16 %v100_v4, %v92_v2  ;;  %v506_v13 = vpack.c.bf16 %v102_v7, %v94_v5  ;;  %v108_v15 = vld [vmem:[%s1034_s1 + $0x300] sm:$0xff] }
  0x12   :  { %467 = vmatpush1.bf16.msra.mxu0 %v466_v51  ;;  %v117_v9 = vld [vmem:[%s1034_s1 + $0x348] sm:$0xff]  ;;  %v119_v11 = vld [vmem:[%s1034_s1 + $0x358] sm:$0xff]  ;;  %v116_v16 = vld [vmem:[%s1034_s1 + $0x340] sm:$0xff] }
  0x13   :  { %499 = vmatpush1.bf16.msra.mxu1 %v498_v52  ;;  %469 = vmatprep.subr.bf16.mxu0 %v468_v53  ;;  %v476_v14 = vpack.c.bf16 %v117_v9, %v109_v8  ;;  %v110_v17 = vld [vmem:[%s1034_s1 + $0x310] sm:$0xff]  ;;  %v508_v18 = vpack.c.bf16 %v119_v11, %v111_v10  ;;  %v125_v20 = vld [vmem:[%s1034_s1 + $0x388] sm:$0xff]  ;;  %v127_v22 = vld [vmem:[%s1034_s1 + $0x398] sm:$0xff]  ;;  %v478_v24 = vpack.c.bf16 %v116_v16, %v108_v15 }
  0x14   :  { %501 = vmatprep.subr.bf16.mxu1 %v500_v57  ;;  %v118_v19 = vld [vmem:[%s1034_s1 + $0x350] sm:$0xff]  ;;  %v133_v21 = vld [vmem:[%s1034_s1 + $0x3c8] sm:$0xff]  ;;  %v135_v23 = vld [vmem:[%s1034_s1 + $0x3d8] sm:$0xff] }
  0x15   :  { %v510_v25 = vpack.c.bf16 %v118_v19, %v110_v17  ;;  %v480_v26 = vpack.c.bf16 %v133_v21, %v125_v20  ;;  %v124_v27 = vld [vmem:[%s1034_s1 + $0x380] sm:$0xff]  ;;  %v126_v29 = vld [vmem:[%s1034_s1 + $0x390] sm:$0xff]  ;;  %v512_v30 = vpack.c.bf16 %v135_v23, %v127_v22  ;;  %v17_v32 = vld [vmem:[%s1034_s1 + $0x28] sm:$0xff] }
  0x16   :  { %471 = vmatpush1.bf16.msra.mxu0 %v470_v63  ;;  %v132_v28 = vld [vmem:[%s1034_s1 + $0x3c0] sm:$0xff]  ;;  %v134_v31 = vld [vmem:[%s1034_s1 + $0x3d0] sm:$0xff]  ;;  %v25_v33 = vld [vmem:[%s1034_s1 + $0x68] sm:$0xff] }
  0x17   :  { %503 = vmatpush1.bf16.msra.mxu1 %v502_v0  ;;  %473 = vmatprep.subr.bf16.mxu0 %v472_v1  ;;  %v19_v34 = vld [vmem:[%s1034_s1 + $0x38] sm:$0xff]  ;;  %v482_v36 = vpack.c.bf16 %v132_v28, %v124_v27  ;;  %v514_v37 = vpack.c.bf16 %v134_v31, %v126_v29  ;;  %v516_v38 = vpack.c.bf16 %v25_v33, %v17_v32  ;;  %v16_v39 = vld [vmem:[%s1034_s1 + $0x20] sm:$0xff]  ;;  %v18_v41 = vld [vmem:[%s1034_s1 + $0x30] sm:$0xff] }
  0x18   :  { %505 = vmatprep.subr.bf16.mxu1 %v504_v6  ;;  %v27_v35 = vld [vmem:[%s1034_s1 + $0x78] sm:$0xff]  ;;  %v24_v40 = vld [vmem:[%s1034_s1 + $0x60] sm:$0xff]  ;;  %v26_v43 = vld [vmem:[%s1034_s1 + $0x70] sm:$0xff] }
  0x19   :  { %v548_v42 = vpack.c.bf16 %v27_v35, %v19_v34  ;;  %v33_v44 = vld [vmem:[%s1034_s1 + $0xa8] sm:$0xff]  ;;  %v35_v46 = vld [vmem:[%s1034_s1 + $0xb8] sm:$0xff]  ;;  %v846_v48 = vld [vmem:[%s1035_s0] sm:$0xff]  ;;  %v518_v49 = vpack.c.bf16 %v24_v40, %v16_v39  ;;  %v550_v50 = vpack.c.bf16 %v26_v43, %v18_v41 }
  0x1a   :  { %475 = vmatpush1.bf16.msra.mxu0 %v474_v12  ;;  %v41_v45 = vld [vmem:[%s1034_s1 + $0xe8] sm:$0xff]  ;;  %v43_v47 = vld [vmem:[%s1034_s1 + $0xf8] sm:$0xff]  ;;  %v32_v52 = vld [vmem:[%s1034_s1 + $0xa0] sm:$0xff] }
  0x1b   :  { %507 = vmatpush1.bf16.msra.mxu1 %v506_v13  ;;  %477 = vmatprep.subr.bf16.mxu0 %v476_v14  ;;  %v520_v51 = vpack.c.bf16 %v41_v45, %v33_v44  ;;  %v40_v53 = vld [vmem:[%s1034_s1 + $0xe0] sm:$0xff]  ;;  %v34_v54 = vld [vmem:[%s1034_s1 + $0xb0] sm:$0xff]  ;;  %v552_v55 = vpack.c.bf16 %v43_v47, %v35_v46  ;;  %v49_v57 = vld [vmem:[%s1034_s1 + $0x128] sm:$0xff] }
  0x1c   :  { %509 = vmatprep.subr.bf16.mxu1 %v508_v18  ;;  %v42_v56 = vld [vmem:[%s1034_s1 + $0xf0] sm:$0xff]  ;;  %v57_v58 = vld [vmem:[%s1034_s1 + $0x168] sm:$0xff]  ;;  %v51_v59 = vld [vmem:[%s1034_s1 + $0x138] sm:$0xff]  ;;  %v522_v61 = vpack.c.bf16 %v40_v53, %v32_v52 }
  0x1d   :  { %v59_v60 = vld [vmem:[%s1034_s1 + $0x178] sm:$0xff]  ;;  %v554_v62 = vpack.c.bf16 %v42_v56, %v34_v54  ;;  %v524_v63 = vpack.c.bf16 %v57_v58, %v49_v57  ;;  %v48_v0 = vld [vmem:[%s1034_s1 + $0x120] sm:$0xff]  ;;  %v50_v2 = vld [vmem:[%s1034_s1 + $0x130] sm:$0xff] }
  0x1e   :  { %479 = vmatpush1.bf16.msra.mxu0 %v478_v24  ;;  %v56_v1 = vld [vmem:[%s1034_s1 + $0x160] sm:$0xff]  ;;  %v556_v4 = vpack.c.bf16 %v59_v60, %v51_v59  ;;  %v58_v5 = vld [vmem:[%s1034_s1 + $0x170] sm:$0xff]  ;;  %v65_v6 = vld [vmem:[%s1034_s1 + $0x1a8] sm:$0xff] }
  0x1f   :  { %511 = vmatpush1.bf16.msra.mxu1 %v510_v25  ;;  %481 = vmatprep.subr.bf16.mxu0 %v480_v26  ;;  %v73_v7 = vld [vmem:[%s1034_s1 + $0x1e8] sm:$0xff]  ;;  %v67_v8 = vld [vmem:[%s1034_s1 + $0x1b8] sm:$0xff]  ;;  %v526_v10 = vpack.c.bf16 %v56_v1, %v48_v0  ;;  %v558_v11 = vpack.c.bf16 %v58_v5, %v50_v2  ;;  %v64_v13 = vld [vmem:[%s1034_s1 + $0x1a0] sm:$0xff] }
  0x20   :  { %513 = vmatprep.subr.bf16.mxu1 %v512_v30  ;;  %v75_v9 = vld [vmem:[%s1034_s1 + $0x1f8] sm:$0xff]  ;;  %v528_v12 = vpack.c.bf16 %v73_v7, %v65_v6  ;;  %v72_v14 = vld [vmem:[%s1034_s1 + $0x1e0] sm:$0xff]  ;;  %v66_v15 = vld [vmem:[%s1034_s1 + $0x1b0] sm:$0xff] }
  0x21   :  { %v74_v16 = vld [vmem:[%s1034_s1 + $0x1f0] sm:$0xff]  ;;  %v81_v17 = vld [vmem:[%s1034_s1 + $0x228] sm:$0xff]  ;;  %v83_v19 = vld [vmem:[%s1034_s1 + $0x238] sm:$0xff]  ;;  %v530_v21 = vpack.c.bf16 %v72_v14, %v64_v13 }
  0x22   :  { %483 = vmatpush1.bf16.msra.mxu0 %v482_v36  ;;  %v89_v18 = vld [vmem:[%s1034_s1 + $0x268] sm:$0xff]  ;;  %v91_v20 = vld [vmem:[%s1034_s1 + $0x278] sm:$0xff]  ;;  %v562_v22 = vpack.c.bf16 %v74_v16, %v66_v15  ;;  %v80_v24 = vld [vmem:[%s1034_s1 + $0x220] sm:$0xff] }
  0x23   :  { %515 = vmatpush1.bf16.msra.mxu1 %v514_v37  ;;  %517 = vmatprep.subr.bf16.mxu0 %v516_v38  ;;  %v532_v23 = vpack.c.bf16 %v89_v18, %v81_v17  ;;  %v88_v25 = vld [vmem:[%s1034_s1 + $0x260] sm:$0xff]  ;;  %v82_v26 = vld [vmem:[%s1034_s1 + $0x230] sm:$0xff]  ;;  %v564_v27 = vpack.c.bf16 %v91_v20, %v83_v19  ;;  %v97_v29 = vld [vmem:[%s1034_s1 + $0x2a8] sm:$0xff] }
  0x24   :  { %549 = vmatprep.subr.bf16.mxu1 %v548_v42  ;;  %v90_v28 = vld [vmem:[%s1034_s1 + $0x270] sm:$0xff]  ;;  %v105_v30 = vld [vmem:[%s1034_s1 + $0x2e8] sm:$0xff]  ;;  %v99_v31 = vld [vmem:[%s1034_s1 + $0x2b8] sm:$0xff]  ;;  %v534_v33 = vpack.c.bf16 %v88_v25, %v80_v24 }
  0x25   :  { %205 = vmatmul.mubr.f32.vlgmr.msra.gmra.mrb[0].mxu0 %v846_v48  ;;  %v107_v32 = vld [vmem:[%s1034_s1 + $0x2f8] sm:$0xff]  ;;  %v566_v34 = vpack.c.bf16 %v90_v28, %v82_v26  ;;  %v536_v35 = vpack.c.bf16 %v105_v30, %v97_v29  ;;  %v96_v36 = vld [vmem:[%s1034_s1 + $0x2a0] sm:$0xff]  ;;  %v98_v38 = vld [vmem:[%s1034_s1 + $0x2b0] sm:$0xff] }
  0x26   :  { %276 = vmatmul.mubr.f32.vlgmr.msra.gmra.mrb[0].mxu1 %v846_v48  ;;  %519 = vmatpush1.bf16.msra.mxu0 %v518_v49  ;;  %v104_v37 = vld [vmem:[%s1034_s1 + $0x2e0] sm:$0xff]  ;;  %v568_v39 = vpack.c.bf16 %v107_v32, %v99_v31  ;;  %v106_v40 = vld [vmem:[%s1034_s1 + $0x2f0] sm:$0xff]  ;;  %v113_v41 = vld [vmem:[%s1034_s1 + $0x328] sm:$0xff] }
  0x27   :  { %551 = vmatpush1.bf16.msra.mxu1 %v550_v50  ;;  %521 = vmatprep.subr.bf16.mxu0 %v520_v51  ;;  %v121_v42 = vld [vmem:[%s1034_s1 + $0x368] sm:$0xff]  ;;  %v115_v43 = vld [vmem:[%s1034_s1 + $0x338] sm:$0xff]  ;;  %v538_v45 = vpack.c.bf16 %v104_v37, %v96_v36  ;;  %v570_v46 = vpack.c.bf16 %v106_v40, %v98_v38  ;;  %v112_v49 = vld [vmem:[%s1034_s1 + $0x320] sm:$0xff] }
  0x28   :  { %553 = vmatprep.subr.bf16.mxu1 %v552_v55  ;;  %346 = vmatprep.mubr.f32.mxu0 %v597_v3  ;;  %v123_v44 = vld [vmem:[%s1034_s1 + $0x378] sm:$0xff]  ;;  %v540_v47 = vpack.c.bf16 %v121_v42, %v113_v41  ;;  %v120_v50 = vld [vmem:[%s1034_s1 + $0x360] sm:$0xff]  ;;  %v114_v51 = vld [vmem:[%s1034_s1 + $0x330] sm:$0xff] }
  0x29   :  { %417 = vmatprep.mubr.f32.mxu1 %v597_v3  ;;  %v560_v3 = vpack.c.bf16 %v75_v9, %v67_v8  ;;  %v572_v52 = vpack.c.bf16 %v123_v44, %v115_v43  ;;  %v122_v53 = vld [vmem:[%s1034_s1 + $0x370] sm:$0xff]  ;;  %v129_v54 = vld [vmem:[%s1034_s1 + $0x3a8] sm:$0xff]  ;;  %v131_v56 = vld [vmem:[%s1034_s1 + $0x3b8] sm:$0xff]  ;;  %v542_v58 = vpack.c.bf16 %v120_v50, %v112_v49 }
  0x2a   :  { %523 = vmatpush1.bf16.msra.mxu0 %v522_v61  ;;  %v137_v55 = vld [vmem:[%s1034_s1 + $0x3e8] sm:$0xff]  ;;  %v139_v57 = vld [vmem:[%s1034_s1 + $0x3f8] sm:$0xff]  ;;  %v574_v59 = vpack.c.bf16 %v122_v53, %v114_v51  ;;  %v128_v61 = vld [vmem:[%s1034_s1 + $0x3a0] sm:$0xff] }
  0x2b   :  { %555 = vmatpush1.bf16.msra.mxu1 %v554_v62  ;;  %525 = vmatprep.subr.bf16.mxu0 %v524_v63  ;;  %v544_v60 = vpack.c.bf16 %v137_v55, %v129_v54  ;;  %v136_v62 = vld [vmem:[%s1034_s1 + $0x3e0] sm:$0xff]  ;;  %v576_v63 = vpack.c.bf16 %v139_v57, %v131_v56  ;;  %v130_v0 = vld [vmem:[%s1034_s1 + $0x3b0] sm:$0xff] }
  0x2c   :  { %557 = vmatprep.subr.bf16.mxu1 %v556_v4  ;;  %v138_v1 = vld [vmem:[%s1034_s1 + $0x3f0] sm:$0xff]  ;;  %v546_v2 = vpack.c.bf16 %v136_v62, %v128_v61 }
  0x2d   :  { %v578_v4 = vpack.c.bf16 %v138_v1, %v130_v0 }
  0x2e   :  { %527 = vmatpush1.bf16.msra.mxu0 %v526_v10 }
  0x2f   :  { %559 = vmatpush1.bf16.msra.mxu1 %v558_v11  ;;  %529 = vmatprep.subr.bf16.mxu0 %v528_v12 }
  0x30   :  { %561 = vmatprep.subr.bf16.mxu1 %v560_v3 }
  0x32   :  { %531 = vmatpush1.bf16.msra.mxu0 %v530_v21 }
  0x33   :  { %563 = vmatpush1.bf16.msra.mxu1 %v562_v22  ;;  %533 = vmatprep.subr.bf16.mxu0 %v532_v23 }
  0x34   :  { %565 = vmatprep.subr.bf16.mxu1 %v564_v27 }
  0x36   :  { %535 = vmatpush1.bf16.msra.mxu0 %v534_v33 }
  0x37   :  { %567 = vmatpush1.bf16.msra.mxu1 %v566_v34  ;;  %537 = vmatprep.subr.bf16.mxu0 %v536_v35 }
  0x38   :  { %569 = vmatprep.subr.bf16.mxu1 %v568_v39 }
  0x3a   :  { %539 = vmatpush1.bf16.msra.mxu0 %v538_v45 }
  0x3b   :  { %571 = vmatpush1.bf16.msra.mxu1 %v570_v46  ;;  %541 = vmatprep.subr.bf16.mxu0 %v540_v47 }
  0x3c   :  { %573 = vmatprep.subr.bf16.mxu1 %v572_v52 }
  0x3e   :  { %543 = vmatpush1.bf16.msra.mxu0 %v542_v58 }
  0x3f   :  { %575 = vmatpush1.bf16.msra.mxu1 %v574_v59  ;;  %545 = vmatprep.subr.bf16.mxu0 %v544_v60 }
  0x40   :  { %577 = vmatprep.subr.bf16.mxu1 %v576_v63 }
  0x42   :  { %547 = vmatpush1.bf16.msra.mxu0 %v546_v2 }
  0x43   :  { %579 = vmatpush1.bf16.msra.mxu1 %v578_v4 }
  0x45   :  { %347 = vmatmul.mubr.f32.vlgmr.msra.gmra.mrb[2].mxu0 %v846_v48 }
  0x46   :  { %418 = vmatmul.mubr.f32.vlgmr.msra.gmra.mrb[2].mxu1 %v846_v48 }
  0xf8   :  { %v206_v5 = vpop.f32.mrb[0].mxu0 }
  0xf9   :  { %581 = vtanh.f32 %v206_v5  ;;  %v277_v6 = vpop.f32.mrb[0].mxu1  ;;  %v208_v7 = vpop.f32.mrb[1].mxu0 }
  0xfa   :  { %583 = vtanh.f32 %v277_v6  ;;  %v279_v8 = vpop.f32.mrb[1].mxu1 }
  0xfb   :  { %585 = vtanh.f32 %v208_v7 }
  0xfc   :  { %587 = vtanh.f32 %v279_v8 }
 0x103   :  { %v582_v9 = vpop.eup %581 }
 0x104   :  { %v584_v10 = vpop.eup %583  ;;  %v432_v11 = vmul.f32 %v582_v9, %v206_v5 }
 0x105   :  { %v586_v12 = vpop.eup %585  ;;  %v434_v13 = vmul.f32 %v584_v10, %v277_v6 }
 0x106   :  { %v588_v14 = vpop.eup %587  ;;  %440 = vst [vmem:[%s1036_s2] sm:$0xff] %v432_v11  ;;  %v433_v15 = vmul.f32 %v586_v12, %v208_v7 }
 0x107   :  { %442 = vst [vmem:[%s1036_s2 + $0x10] sm:$0xff] %v434_v13  ;;  %v435_v48 = vmul.f32 %v588_v14, %v279_v8 }
 0x108   :  { %441 = vst [vmem:[%s1036_s2 + $0x8] sm:$0xff] %v433_v15 }
 0x109   :  { %443 = vst [vmem:[%s1036_s2 + $0x18] sm:$0xff] %v435_v48 }
 0x118   :  { %v348_v3 = vpop.f32.mrb[2].mxu0 }
 0x119   :  { %589 = vtanh.f32 %v348_v3  ;;  %v419_v16 = vpop.f32.mrb[2].mxu1  ;;  %v350_v17 = vpop.f32.mrb[3].mxu0 }
 0x11a   :  { %591 = vtanh.f32 %v419_v16  ;;  %v421_v18 = vpop.f32.mrb[3].mxu1 }
 0x11b   :  { %593 = vtanh.f32 %v350_v17 }
 0x11c   :  { %595 = vtanh.f32 %v421_v18 }
 0x123   :  { %v590_v19 = vpop.eup %589 }
 0x124   :  { %v592_v20 = vpop.eup %591  ;;  %v436_v21 = vmul.f32 %v590_v19, %v348_v3 }
 0x125   :  { %v594_v22 = vpop.eup %593  ;;  %v438_v23 = vmul.f32 %v592_v20, %v419_v16 }
 0x126   :  { %v596_v24 = vpop.eup %595  ;;  %444 = vst [vmem:[%s1036_s2 + $0x20] sm:$0xff] %v436_v21  ;;  %v437_v25 = vmul.f32 %v594_v22, %v350_v17 }
 0x127   :  { %446 = vst [vmem:[%s1036_s2 + $0x30] sm:$0xff] %v438_v23  ;;  %v439_v26 = vmul.f32 %v596_v24, %v421_v18 }
 0x128   :  { %445 = vst [vmem:[%s1036_s2 + $0x28] sm:$0xff] %v437_v25 }
 0x129   :  { %447 = vst [vmem:[%s1036_s2 + $0x38] sm:$0xff] %v439_v26 }

</bundles_post_ra>
